<compile_context>
chip_gen: v5e
topology: v5e:2x2
jax: 0.10.0
libtpu: 0.0.40
codegen_flags: <defaults>
</compile_context>

<pallas_src>
import functools

import jax
import jax.numpy as jnp
from jax.experimental import pallas as pl
from jax.experimental.pallas import tpu as pltpu


def _attn_ctx_kernel(x_ref, w1_ref, b1_ref, w2_ref, o_ref, *, l_valid, act):
    # x_ref: (TB, L, C); w1_ref: (C, C) = fc1.weight.T; b1_ref: (1, C);
    # w2_ref: (1, C) = fc2.weight; o_ref: (TB, C).
    tb, L, C = x_ref.shape

    x3d = x_ref[...]                               # single load, reused below
    x2d = x3d.reshape(tb * L, C)                   # free sublane collapse (L % 8 == 0)

    # fc1 (+activation) fused over all tb*L rows: one large MXU matmul per step.
    h = jnp.dot(x2d, w1_ref[...], preferred_element_type=jnp.float32) + b1_ref[...]
    if act == "tanh":
        uit = jnp.tanh(h)
    else:  # leaky_relu (PyTorch default negative_slope = 0.01)
        uit = jnp.where(h >= 0, h, 0.01 * h)

    # fc2 (no bias): contract over C on the lane axis against the (1, C) row.
    ait = jnp.sum(uit * w2_ref[...], axis=-1, keepdims=True)    # (tb*L, 1)
    ait = ait.reshape(tb, L, 1)                                  # (tb, L, 1)

    if l_valid < L:
        # Sequence axis was padded in the wrapper: mask padded rows to -inf so
        # they contribute exp(.) == 0 to the softmax.
        pos = jax.lax.broadcasted_iota(jnp.int32, (tb, L, 1), 1)
        ait = jnp.where(pos < l_valid, ait, -jnp.inf)

    # Batched softmax over the sequence axis — one vectorized epilogue.
    m = jnp.max(ait, axis=1, keepdims=True)        # (tb, 1, 1)
    e = jnp.exp(ait - m)                           # (tb, L, 1)
    d = jnp.sum(e, axis=1, keepdims=True)          # (tb, 1, 1)
    r = pl.reciprocal(d, approx=True)              # EUP vrcp (free slot)
    r = r * (2.0 - d * r)                          # one Newton step -> ~f32 accuracy
    attn = e * r                                   # (tb, L, 1)

    # out[b, :] = sum_l attn[b, l] * x[b, l, :]    (broadcast mul + sublane reduce)
    o_ref[...] = jnp.sum(attn * x3d, axis=1).astype(o_ref.dtype)   # (tb, C)


def attention_with_context(x, w1_t, b1, w2, *, act_fn="tanh",
                           target_rows=512,
                           x_vmem_budget_bytes=24 << 20):
    """x: (B, L, C). w1_t: (C, C) = fc1.weight.T. b1: (1, C). w2: (1, C)."""
    B, L, C = x.shape
    itemsize = jnp.dtype(x.dtype).itemsize

    # Pad L to a sublane multiple so the in-kernel reshape is layout-free.
    L_pad = max(8, ((L + 7) // 8) * 8)

    # --- batch-group tile selection -----------------------------------------
    per_batch_bytes = L_pad * C * itemsize
    tb = max(1, target_rows // L_pad)                                   # fill MXU rows
    tb = min(tb, max(1, x_vmem_budget_bytes // (2 * per_batch_bytes)))  # x dbl-buffer fit
    if B >= 16:
        # v7x megacore: keep >= 2 batch groups so the parallel axis can shard.
        tb = min(tb, pl.cdiv(B, 2))
    if tb >= B:
        tb = B                                # single group: out block == full array dims
    else:
        tb = max(8, (tb // 8) * 8)            # keep the (tb, C) out block sublane-aligned
        tb = min(tb, B)

    n_groups = pl.cdiv(B, tb)
    Bp = n_groups * tb

    x_in = x
    if Bp != B or L_pad != L:
        x_in = jnp.pad(x, ((0, Bp - B), (0, L_pad - L), (0, 0)))

    # --- VMEM budget & scheduler cost hint -----------------------------------
    x_block_bytes = tb * L_pad * C * itemsize
    vmem_needed = (2 * x_block_bytes                 # x double-buffer
                   + 2 * (C * C + 2 * C) * 4         # fc1/fc2 weight blocks
                   + 2 * tb * C * itemsize           # out double-buffer
                   + 3 * tb * L_pad * C * 4)         # uit / attn f32 intermediates
    vmem_limit = int(min(64 << 20, max(16 << 20, 2 * vmem_needed)))

    cost = pl.CostEstimate(
        flops=2 * Bp * L_pad * C * C + 4 * Bp * L_pad * C,
        transcendentals=Bp * L_pad * (C + 1),
        bytes_accessed=itemsize * (Bp * L_pad * C + Bp * C) + 4 * (C * C + 2 * C),
    )

    kernel = functools.partial(_attn_ctx_kernel, l_valid=L, act=act_fn)

    out = pl.pallas_call(
        kernel,
        out_shape=jax.ShapeDtypeStruct((Bp, C), x.dtype),
        grid_spec=pltpu.PrefetchScalarGridSpec(
            num_scalar_prefetch=0,
            grid=(n_groups,),
            in_specs=[
                pl.BlockSpec((tb, L_pad, C), lambda i: (i, 0, 0)),  # x batch group
                pl.BlockSpec((C, C), lambda i: (0, 0)),             # fc1.weight.T
                pl.BlockSpec((1, C), lambda i: (0, 0)),             # fc1.bias
                pl.BlockSpec((1, C), lambda i: (0, 0)),             # fc2.weight row
            ],
            out_specs=pl.BlockSpec((tb, C), lambda i: (i, 0)),      # dense output slab
        ),
        compiler_params=pltpu.CompilerParams(
            dimension_semantics=("parallel",),
            vmem_limit_bytes=vmem_limit),
        cost_estimate=cost,
    )(x_in, w1_t, b1, w2)
    return out[:B]                                                   # (B, C)


def _reference(x, w1_t, b1, w2):
    uit = jnp.tanh(x @ w1_t + b1)              # (B, L, C)
    ait = uit @ w2.T                           # (B, L, 1)
    attn = jax.nn.softmax(ait, axis=1)         # (B, L, 1)
    attn_t = jnp.swapaxes(attn, -1, -2)        # (B, 1, L)
    return (attn_t @ x)[:, 0, :]               # (B, C)


if __name__ == "__main__":
    B, L, C = 2, 8, 32   # batch, seq length, hidden_dim

    key = jax.random.PRNGKey(0)
    kx, k1, kb1, k2 = jax.random.split(key, 4)

    x = jax.random.normal(kx, (B, L, C), dtype=jnp.float32)

    # nn.Linear param shapes: fc1.weight (C, C), fc1.bias (C,), fc2.weight (1, C).
    # fc1.weight is pre-transposed so the kernel computes x @ W1^T as x @ w1_t.
    w1_t = jax.random.normal(k1, (C, C), dtype=jnp.float32) * 0.1    # fc1.weight.T
    b1 = jax.random.normal(kb1, (1, C), dtype=jnp.float32) * 0.1     # fc1.bias
    w2 = jax.random.normal(k2, (1, C), dtype=jnp.float32) * 0.1      # fc2.weight

    out = attention_with_context(x, w1_t, b1, w2)
    out = jax.block_until_ready(out)

    ref = _reference(x, w1_t, b1, w2)
    assert out.shape == (B, C)
    # approx reciprocal (+1 Newton step) in the softmax -> slightly looser tol.
    assert jnp.allclose(out, ref, atol=1e-4, rtol=1e-4), "mismatch vs reference"

    print("KERNEL_OK")
</pallas_src>

<mosaic_0001>
module attributes {stable_mosaic.version = 11 : i64} {
  func.func @_attn_ctx_kernel(%arg0: i32, %arg1: memref<2x8x32xf32, #tpu.memory_space<vmem>>, %arg2: memref<32x32xf32, #tpu.memory_space<vmem>>, %arg3: memref<1x32xf32, #tpu.memory_space<vmem>>, %arg4: memref<1x32xf32, #tpu.memory_space<vmem>>, %arg5: memref<2x32xf32, #tpu.memory_space<vmem>>) attributes {dimension_semantics = [#tpu.dimension_semantics<parallel>], iteration_bounds = array<i64: 1>, scalar_prefetch = 0 : i64, scratch_operands = 0 : i64, tpu.core_type = #tpu.core_type<tc>, window_params = [{transform_indices = @transform_0, window_bounds = array<i64: 2, 8, 32>}, {pipeline_mode = #tpu.pipeline_mode<synchronous>, transform_indices = @transform_1, window_bounds = array<i64: 32, 32>}, {pipeline_mode = #tpu.pipeline_mode<synchronous>, transform_indices = @transform_2, window_bounds = array<i64: 1, 32>}, {pipeline_mode = #tpu.pipeline_mode<synchronous>, transform_indices = @transform_3, window_bounds = array<i64: 1, 32>}, {transform_indices = @transform_4, window_bounds = array<i64: 2, 32>}]} {
    %c0 = arith.constant 0 : index
    %c0_0 = arith.constant 0 : index
    %c0_1 = arith.constant 0 : index
    %0 = vector.load %arg1[%c0, %c0_0, %c0_1] : memref<2x8x32xf32, #tpu.memory_space<vmem>>, vector<2x8x32xf32>
    %1 = vector.shape_cast %0 : vector<2x8x32xf32> to vector<16x32xf32>
    %c0_2 = arith.constant 0 : index
    %c0_3 = arith.constant 0 : index
    %2 = vector.load %arg2[%c0_2, %c0_3] : memref<32x32xf32, #tpu.memory_space<vmem>>, vector<32x32xf32>
    %cst = arith.constant dense<0.000000e+00> : vector<16x32xf32>
    %3 = tpu.matmul %1, %2, %cst {dimension_numbers = #tpu.dot_dimension_numbers<[1], [0], [0], [1], [0, 0, 1, 1], [], []>} : vector<16x32xf32>, vector<32x32xf32>, vector<16x32xf32> -> vector<16x32xf32>
    %c0_4 = arith.constant 0 : index
    %c0_5 = arith.constant 0 : index
    %4 = vector.load %arg3[%c0_4, %c0_5] : memref<1x32xf32, #tpu.memory_space<vmem>>, vector<1x32xf32>
    %5 = vector.broadcast %4 : vector<1x32xf32> to vector<16x32xf32>
    %6 = arith.addf %3, %5 : vector<16x32xf32>
    %7 = math.tanh %6 : vector<16x32xf32>
    %c0_6 = arith.constant 0 : index
    %c0_7 = arith.constant 0 : index
    %8 = vector.load %arg4[%c0_6, %c0_7] : memref<1x32xf32, #tpu.memory_space<vmem>>, vector<1x32xf32>
    %9 = vector.broadcast %8 : vector<1x32xf32> to vector<16x32xf32>
    %10 = arith.mulf %7, %9 : vector<16x32xf32>
    %cst_8 = arith.constant dense<0.000000e+00> : vector<16xf32>
    %11 = vector.multi_reduction <add>, %10, %cst_8 [1] : vector<16x32xf32> to vector<16xf32>
    %12 = vector.shape_cast %11 : vector<16xf32> to vector<16x1xf32>
    %13 = vector.shape_cast %12 : vector<16x1xf32> to vector<2x8x1xf32>
    %cst_9 = arith.constant dense<0xFF800000> : vector<2x1xf32>
    %14 = vector.multi_reduction <maximumf>, %13, %cst_9 [1] : vector<2x8x1xf32> to vector<2x1xf32>
    %15 = vector.shape_cast %14 : vector<2x1xf32> to vector<2x1x1xf32>
    %16 = vector.broadcast %15 : vector<2x1x1xf32> to vector<2x8x1xf32>
    %17 = arith.subf %13, %16 : vector<2x8x1xf32>
    %18 = math.exp %17 : vector<2x8x1xf32>
    %cst_10 = arith.constant dense<0.000000e+00> : vector<2x1xf32>
    %19 = vector.multi_reduction <add>, %18, %cst_10 [1] : vector<2x8x1xf32> to vector<2x1xf32>
    %20 = vector.shape_cast %19 : vector<2x1xf32> to vector<2x1x1xf32>
    %21 = tpu.reciprocal %20 {approx = true} : vector<2x1x1xf32> -> vector<2x1x1xf32>
    %22 = arith.mulf %20, %21 : vector<2x1x1xf32>
    %cst_11 = arith.constant 2.000000e+00 : f32
    %23 = vector.broadcast %cst_11 : f32 to vector<2x1x1xf32>
    %24 = arith.subf %23, %22 : vector<2x1x1xf32>
    %25 = arith.mulf %21, %24 : vector<2x1x1xf32>
    %26 = vector.broadcast %25 : vector<2x1x1xf32> to vector<2x8x1xf32>
    %27 = arith.mulf %18, %26 : vector<2x8x1xf32>
    %28 = vector.broadcast %27 : vector<2x8x1xf32> to vector<2x8x32xf32>
    %29 = arith.mulf %28, %0 : vector<2x8x32xf32>
    %cst_12 = arith.constant dense<0.000000e+00> : vector<2x32xf32>
    %30 = vector.multi_reduction <add>, %29, %cst_12 [1] : vector<2x8x32xf32> to vector<2x32xf32>
    %c0_13 = arith.constant 0 : index
    %c0_14 = arith.constant 0 : index
    %31 = vector.load %arg5[%c0_13, %c0_14] : memref<2x32xf32, #tpu.memory_space<vmem>>, vector<2x32xf32>
    tpu.vector_store %arg5[%c0_13, %c0_14], %30 {strides = array<i32>} : memref<2x32xf32, #tpu.memory_space<vmem>>, vector<2x32xf32>,
    return
  }
  func.func @transform_0(%arg0: i32) -> (i32, i32, i32) {
    %c0_i32 = arith.constant 0 : i32
    %c0_i32_0 = arith.constant 0 : i32
    %c0_i32_1 = arith.constant 0 : i32
    return %arg0, %c0_i32, %c0_i32_0 : i32, i32, i32
  }
  func.func @transform_1(%arg0: i32) -> (i32, i32) {
    %c0_i32 = arith.constant 0 : i32
    %c0_i32_0 = arith.constant 0 : i32
    %c0_i32_1 = arith.constant 0 : i32
    return %c0_i32, %c0_i32_0 : i32, i32
  }
  func.func @transform_2(%arg0: i32) -> (i32, i32) {
    %c0_i32 = arith.constant 0 : i32
    %c0_i32_0 = arith.constant 0 : i32
    %c0_i32_1 = arith.constant 0 : i32
    return %c0_i32, %c0_i32_0 : i32, i32
  }
  func.func @transform_3(%arg0: i32) -> (i32, i32) {
    %c0_i32 = arith.constant 0 : i32
    %c0_i32_0 = arith.constant 0 : i32
    %c0_i32_1 = arith.constant 0 : i32
    return %c0_i32, %c0_i32_0 : i32, i32
  }
  func.func @transform_4(%arg0: i32) -> (i32, i32) {
    %c0_i32 = arith.constant 0 : i32
    %c0_i32_0 = arith.constant 0 : i32
    return %arg0, %c0_i32 : i32, i32
  }
}

</mosaic_0001>

<bundles_post_ra>
// kernel: tpu_custom_call.1
= control target key start
LH: loop header
LB: loop body
LE: loop exit
PB: predicated region body
PF: predicated region fallthrough
CT: control target
= control target key end

     0   :  { %9 = vsyncpa [#allocation3], 0  ;;  %s347_s0 = inlined_call_operand.hbm [shape: f32[2,8,32], index: 0, kind: input, shape index: {}]   ;;  %s348_s1 = inlined_call_operand.hbm [shape: f32[32,32], index: 1, kind: input, shape index: {}]   ;;  %s349_s2 = inlined_call_operand.vmem [shape: f32[1,32], index: 2, kind: input, shape index: {}]   ;;  %s350_s3 = inlined_call_operand.vmem [shape: f32[1,32], index: 3, kind: input, shape index: {}]   ;;  %s351_s4 = inlined_call_operand.hbm [shape: f32[2,32], index: 4, kind: output, shape index: {}]  }
   0x1   :  { %10 = vsyncpa [#allocation6], 0 }
   0x2   :  { %11 = vsyncpa [#allocation4], 0  ;;  %s16_s17 = sshll.u32 %s347_s0, 4  ;;  %s288_s18 = smov [#allocation2]   ;;  %s17_s17 = int_to_ptr.hbm [resolvable:$true] %s16_s17 }
   0x3   :  { %s18_s19 = sshll.u32 %s288_s18, 4  ;;  %s29_s22 = sshll.u32 %s348_s1, 4  ;;  %s19_s19 = int_to_ptr.vmem [resolvable:$true] %s18_s19  ;;  %s30_s22 = int_to_ptr.hbm [resolvable:$true] %s29_s22 }
   0x4   :  { %s289_s23 = smov 128   ;;  %s290_s24 = smov 8  }
   0x5   :  { %24 = dma.hbm_to_vmem [thread:$0]  %s17_s17, 256, %s19_s19, [#allocation3], %s289_s23, %s289_s23, %s290_s24  }
   0x6   :  { %s291_s25 = smov [#allocation5]  }
   0x7   :  { %s31_s26 = sshll.u32 %s291_s25, 4  ;;  %s32_s26 = int_to_ptr.vmem [resolvable:$true] %s31_s26 }
   0x8   :  { %37 = dma.hbm_to_vmem [thread:$0]  %s30_s22, 512, %s32_s26, [#allocation6], %s289_s23, %s289_s23, %s290_s24  }
   0x9   :  { %282 = dma.done.wait [#allocation3], 256  }
   0xa   :  { %283 = vsyncadd [#allocation3], 4294967040 }
   0xb   :  { %284 = dma.done.wait [#allocation6], 512  }
   0xc   :  { %285 = vsyncadd [#allocation6], 4294966784  ;;  %v55_v0 = vld [vmem:[#allocation5 + $0x18] sm:$0xff]  ;;  %v54_v1 = vld [vmem:[#allocation5 + $0x10] sm:$0xff]  ;;  %vm60_vm0 = vcmask 261120   ;;  %s174_s5 = sshll.u32 %s351_s4, 4  ;;  %s175_s5 = int_to_ptr.hbm [resolvable:$true] %s174_s5 }
   0xd   :  { %79 = vmatpush.msra.mxu0 %v55_v0  ;;  %187 = vmatpush.msra.mxu1 %v55_v0  ;;  %v53_v2 = vld [vmem:[#allocation5 + $0x8] sm:$0xff]  ;;  %v52_v3 = vld [vmem:[#allocation5] sm:$0xff]  ;;  %v324_v4 = vld [vmem:[#allocation2] sm:$0xff]  ;;  %vm162_vm1 = vcmask 1041409   ;;  %vm165_vm2 = vcmask 254976  }
   0xe   :  { %v326_v5 = vld [vmem:[#allocation2 + $0x8] sm:$0xff]  ;;  %v196_v6 = vld [vmem:[%s349_s2] ss:$0 sm:$0xff]  ;;  %s292_s2 = smov [#allocation7]  }
   0xf   :  { %80 = vmatpush.msra.mxu0 %v54_v1  ;;  %188 = vmatpush.msra.mxu1 %v54_v1  ;;  %v197_v11 = vld [vmem:[%s350_s3] ss:$0 sm:$0xff]  ;;  %s172_s3 = sshll.u32 %s292_s2, 4  ;;  %s173_s3 = int_to_ptr.vmem [resolvable:$true] %s172_s3 }
  0x11   :  { %81 = vmatpush.msra.mxu0 %v53_v2  ;;  %189 = vmatpush.msra.mxu1 %v53_v2 }
  0x13   :  { %82 = vmatpush.msra.mxu0 %v52_v3  ;;  %190 = vmatpush.msra.mxu1 %v52_v3 }
  0x14   :  { %185 = vmatmul.msk.f32.vlgmr.msra.gmra.mxu0 %vm60_vm0, %v324_v4  ;;  %186 = vmatmul.msk.f32.vlgmr.msra.gmra.mxu1 %vm60_vm0, %v326_v5 }
  0x91   :  { %v84_v7 = vpop.f32.mrf.mxu0  ;;  %v87_v8 = vpop.f32.mrf.mxu1 }
  0x92   :  { %v85_v9 = vadd.f32 %v196_v6, %v84_v7  ;;  %v88_v10 = vadd.f32 %v196_v6, %v87_v8 }
  0x94   :  { %198 = vtanh.f32 %v85_v9 }
  0x95   :  { %200 = vtanh.f32 %v88_v10 }
  0x9a   :  { %v199_v12 = vpop.eup %198 }
  0x9b   :  { %v96_v13 = vmul.f32 %v199_v12, %v197_v11  ;;  %v201_v14 = vpop.eup %200 }
  0x9c   :  { %v97_v16 = vmul.f32 %v201_v14, %v197_v11 }
  0x9d   :  { %v98_v15 = vsel %vm60_vm0, %v96_v13, 0.0 }
  0x9e   :  { %99 = vadd.xlane.f32.xlu0 %v98_v15  ;;  %v101_v17 = vsel %vm60_vm0, %v97_v16, 0.0 }
  0xa6   :  { %102 = vadd.xlane.f32.xlu0 %v101_v17 }
 0x111   :  { %v100_v18 = vpop.xlane.xlu0 %99 }
 0x112   :  { %v104_v19 = vrot.slane %v100_v18, 4 }
 0x114   :  { %v105_v20 = vmax.f32 %v100_v18, %v104_v19 }
 0x116   :  { %v106_v21 = vrot.slane %v105_v20, 2 }
 0x118   :  { %v107_v22 = vmax.f32 %v105_v20, %v106_v21 }
 0x119   :  { %v103_v23 = vpop.xlane.xlu0 %102 }
 0x11a   :  { %v108_v24 = vrot.slane %v107_v22, 1  ;;  %v110_v25 = vrot.slane %v103_v23, 4 }
 0x11c   :  { %v109_v26 = vmax.f32 %v107_v22, %v108_v24  ;;  %v111_v27 = vmax.f32 %v103_v23, %v110_v25 }
 0x11e   :  { %v116_v28 = vsub.f32 %v100_v18, %v109_v26  ;;  %v112_v29 = vrot.slane %v111_v27, 2 }
 0x120   :  { %v118_v30 = vmul.f32 1.442695, %v116_v28  ;;  %v113_v31 = vmax.f32 %v111_v27, %v112_v29 }
 0x122   :  { %202 = vpow2.f32 %v118_v30  ;;  %v114_v32 = vrot.slane %v113_v31, 1 }
 0x124   :  { %v115_v33 = vmax.f32 %v113_v31, %v114_v32 }
 0x126   :  { %v117_v34 = vsub.f32 %v103_v23, %v115_v33 }
 0x128   :  { %v203_v35 = vpop.eup %202  ;;  %v120_v36 = vmul.f32 1.442695, %v117_v34 }
 0x129   :  { %v122_v37 = vrot.slane %v203_v35, 4 }
 0x12a   :  { %204 = vpow2.f32 %v120_v36 }
 0x12b   :  { %v123_v38 = vadd.f32 %v203_v35, %v122_v37 }
 0x12d   :  { %v124_v39 = vrot.slane %v123_v38, 2 }
 0x12f   :  { %v125_v40 = vadd.f32 %v124_v39, %v123_v38 }
 0x130   :  { %v205_v41 = vpop.eup %204 }
 0x131   :  { %v126_v42 = vrot.slane %v125_v40, 1  ;;  %v128_v43 = vrot.slane %v205_v41, 4 }
 0x133   :  { %v127_v44 = vadd.f32 %v126_v42, %v125_v40  ;;  %v129_v45 = vadd.f32 %v205_v41, %v128_v43 }
 0x135   :  { %206 = vrcp.f32 %v127_v44  ;;  %v130_v46 = vrot.slane %v129_v45, 2 }
 0x137   :  { %v131_v47 = vadd.f32 %v130_v46, %v129_v45 }
 0x139   :  { %v132_v48 = vrot.slane %v131_v47, 1 }
 0x13b   :  { %v207_v49 = vpop.eup %206  ;;  %v133_v50 = vadd.f32 %v132_v48, %v131_v47 }
 0x13c   :  { %v136_v51 = vmul.f32 %v207_v49, %v127_v44 }
 0x13d   :  { %208 = vrcp.f32 %v133_v50 }
 0x13e   :  { %v138_v52 = vsub.f32 2.0, %v136_v51 }
 0x140   :  { %v140_v53 = vmul.f32 %v207_v49, %v138_v52 }
 0x142   :  { %v142_v54 = vmul.f32 %v203_v35, %v140_v53 }
 0x143   :  { %v209_v55 = vpop.eup %208 }
 0x144   :  { %v137_v56 = vmul.f32 %v209_v55, %v133_v50  ;;  %v144_v57 = vmul.f32 %v142_v54, %v324_v4 }
 0x146   :  { %v139_v58 = vsub.f32 2.0, %v137_v56  ;;  %v146_v59 = vsel %vm60_vm0, %v144_v57, 0.0 }
 0x147   :  { %v147_v60 = vrot.slane %v146_v59, 4 }
 0x148   :  { %v141_v61 = vmul.f32 %v209_v55, %v139_v58 }
 0x149   :  { %v148_v62 = vadd.f32 %v147_v60, %v146_v59 }
 0x14a   :  { %v143_v63 = vmul.f32 %v205_v41, %v141_v61 }
 0x14b   :  { %v149_v1 = vrot.slane %v148_v62, 2 }
 0x14c   :  { %v145_v0 = vmul.f32 %v143_v63, %v326_v5 }
 0x14d   :  { %v150_v6 = vadd.f32 %v149_v1, %v148_v62 }
 0x14e   :  { %v153_v2 = vsel %vm60_vm0, %v145_v0, 0.0 }
 0x14f   :  { %v154_v3 = vrot.slane %v153_v2, 4  ;;  %v151_v9 = vrot.slane %v150_v6, 1 }
 0x151   :  { %v155_v7 = vadd.f32 %v154_v3, %v153_v2  ;;  %v152_v4 = vadd.f32 %v151_v9, %v150_v6 }
 0x153   :  { %v156_v8 = vrot.slane %v155_v7, 2 }
 0x155   :  { %v157_v10 = vadd.f32 %v156_v8, %v155_v7 }
 0x157   :  { %v158_v11 = vrot.slane %v157_v10, 1 }
 0x159   :  { %v159_v12 = vadd.f32 %v158_v11, %v157_v10 }
 0x15b   :  { %v163_v5 = vsel %vm162_vm1, %v159_v12, %v152_v4 }
 0x15c   :  { %166 = vst.msk [vmem:[#allocation7] sm:$0x3] %vm165_vm2, %v163_v5 }
 0x15d   :  { %177 = dma.vmem_to_hbm [thread:$0]  %s173_s3, 32, %s175_s5, [#allocation4]  }
 0x15e   :  { %286 = dma.done.wait [#allocation4], 32  }
 0x15f   :  { %287 = vsyncadd [#allocation4], 4294967264 }
 0x160   :  { %182 = vsyncpa [#allocation3], 1 }
 0x161   :  { %183 = vsyncpa [#allocation6], 1 }
 0x162   :  { %184 = vsyncpa [#allocation4], 1 }

</bundles_post_ra>
